<compile_context>
chip_gen: v7x
topology: tpu7x:2x2x1
jax: 0.10.0
libtpu: 0.0.40
codegen_flags: <defaults>
</compile_context>

<pallas_src>
import functools

import jax
import jax.numpy as jnp
from jax.experimental import pallas as pl
from jax.experimental.pallas import tpu as pltpu


_SQRT_2_OVER_PI = 0.7978845608028654


def _gelu_tanh(v):
    # tanh-approximate GELU (shared by kernel and reference).
    return 0.5 * v * (1.0 + jnp.tanh(_SQRT_2_OVER_PI * (v + 0.044715 * v * v * v)))


def _layer_norm(v, g, b, eps):
    mu = jnp.mean(v, axis=-1, keepdims=True)
    var = jnp.mean(jnp.square(v - mu), axis=-1, keepdims=True)
    return (v - mu) * jax.lax.rsqrt(var + eps) * g + b


# ---------------------------------------------------------------------------
# Fused transformer-layer kernel
# ---------------------------------------------------------------------------
def _transformer_layer_kernel(x_ref, bias_ref, wqkv_ref, wout_ref,
                              g1_ref, b1_ref, g2_ref, b2_ref,
                              wff1_ref, bff1_ref, wff2_ref, bff2_ref,
                              o_ref, *, n_heads, head_dim, eps, approx_recip):
    inner = n_heads * head_dim
    x = x_ref[...]                    # (rows, D) f32   rows = block_b * seq_len
    bias = bias_ref[...]              # (rows, rows) additive cross-batch mask

    # ---- pre-LN attention --------------------------------------------------
    xn = _layer_norm(x, g1_ref[...], b1_ref[...], eps)

    # Fused dense QKV: one (rows, D) @ (D, 3*inner) MXU contraction; softmax
    # scale is pre-folded into the W_q columns; heads stay lane-packed.
    qkv = jnp.dot(xn, wqkv_ref[...], preferred_element_type=jnp.float32)

    head_outs = []
    for h in range(n_heads):          # static unroll (H is small & fixed)
        q_h = qkv[:, h * head_dim:(h + 1) * head_dim]
        k_h = qkv[:, inner + h * head_dim:inner + (h + 1) * head_dim]
        v_h = qkv[:, 2 * inner + h * head_dim:2 * inner + (h + 1) * head_dim]
        # All block_b batch rows share one (rows, rows) score matmul; the
        # additive bias (-1e30 on cross-batch entries) keeps batches separate
        # without any 3-D relayout reshape / transpose.
        s = jax.lax.dot_general(q_h, k_h, (((1,), (1,)), ((), ())),
                                preferred_element_type=jnp.float32) + bias
        s = s - jnp.max(s, axis=-1, keepdims=True)
        p = jnp.exp(s)
        denom = jnp.sum(p, axis=-1, keepdims=True)
        if approx_recip:
            p = p * pl.reciprocal(denom, approx=True)     # EUP slot, ~free
        else:
            p = p / denom
        head_outs.append(jnp.dot(p, v_h, preferred_element_type=jnp.float32))

    # Lane-packed head concat (fits in one vreg) + ONE fused output projection:
    # the sum over heads happens inside the (rows,inner)@(inner,D) contraction.
    attn = jnp.concatenate(head_outs, axis=-1)            # (rows, inner)
    x = x + jnp.dot(attn, wout_ref[...], preferred_element_type=jnp.float32)

    # ---- pre-LN feed-forward ------------------------------------------------
    xn2 = _layer_norm(x, g2_ref[...], b2_ref[...], eps)
    h1 = jnp.dot(xn2, wff1_ref[...], preferred_element_type=jnp.float32) + bff1_ref[...]
    h1 = _gelu_tanh(h1)
    y = jnp.dot(h1, wff2_ref[...], preferred_element_type=jnp.float32) + bff2_ref[...]
    o_ref[...] = (x + y).astype(o_ref.dtype)


def _default_grid_steps():
    # v7x: 2 TensorCores/chip -> exactly 2 parallel grid steps.
    # v5e / v6e: single TC -> grid is a serial loop, each extra step ~0.35us,
    # so use a single step (working set is KBs, far below any VMEM limit).
    try:
        kind = jax.devices()[0].device_kind.lower()
    except Exception:
        return 1
    return 2 if ("v7" in kind or "tpu7" in kind) else 1


def _pick_block_b(batch, target_steps):
    # Largest divisor of `batch` giving at most `target_steps` grid steps
    # (prime batch sizes degrade to ONE step, not `batch` steps).
    for steps in range(min(target_steps, batch), 0, -1):
        if batch % steps == 0:
            return batch // steps
    return batch


def transformer_layer_forward(x, p, *, n_heads, head_dim, eps=1e-5,
                              block_b=None, target_grid_steps=None,
                              approx_recip=True):
    """One pre-LN transformer layer (Attention+residual, FFN+residual), eval mode.

    x : (B, N, D) activations.
    p : PyTorch-layout parameter dict:
        w_qkv (3*inner, D), w_out (D, inner), ln1/ln2 = (gamma, beta) of (D,),
        w_ff1 (hidden, D), b_ff1 (hidden,), w_ff2 (D, hidden), b_ff2 (D,).
    """
    B, N, D = x.shape
    inner = n_heads * head_dim
    hidden = p['w_ff1'].shape[0]
    assert p['w_qkv'].shape == (3 * inner, D)
    assert p['w_out'].shape == (D, inner)

    if block_b is None:
        if target_grid_steps is None:
            target_grid_steps = _default_grid_steps()
        block_b = _pick_block_b(B, target_grid_steps)
    assert B % block_b == 0, "block_b must divide the batch size"
    rows = block_b * N
    if block_b != B:
        assert rows % 8 == 0, "per-step row block must be sublane (8) aligned"

    # ---- one-time weight repacking (XLA side, outside the kernel) ----------
    scale = head_dim ** (-0.5)
    wqkv = jnp.asarray(p['w_qkv'], jnp.float32).T                  # (D, 3*inner)
    wqkv = wqkv.at[:, :inner].multiply(scale)                      # fold scale into W_q
    wout = jnp.asarray(p['w_out'], jnp.float32).T                  # (inner, D)
    wff1 = jnp.asarray(p['w_ff1'], jnp.float32).T                  # (D, hidden)
    bff1 = jnp.asarray(p['b_ff1'], jnp.float32).reshape(1, hidden)
    wff2 = jnp.asarray(p['w_ff2'], jnp.float32).T                  # (hidden, D)
    bff2 = jnp.asarray(p['b_ff2'], jnp.float32).reshape(1, D)
    g1 = jnp.asarray(p['ln1'][0], jnp.float32).reshape(1, D)
    b1 = jnp.asarray(p['ln1'][1], jnp.float32).reshape(1, D)
    g2 = jnp.asarray(p['ln2'][0], jnp.float32).reshape(1, D)
    b2 = jnp.asarray(p['ln2'][1], jnp.float32).reshape(1, D)

    # Additive block-diagonal mask so all block_b rows share one score matmul.
    blk = jnp.arange(rows, dtype=jnp.int32) // N
    bias = jnp.where(blk[:, None] == blk[None, :], 0.0, -1e30).astype(jnp.float32)

    x_flat = x.reshape(B * N, D).astype(jnp.float32)               # token slab

    kernel = functools.partial(_transformer_layer_kernel, n_heads=n_heads,
                               head_dim=head_dim, eps=eps,
                               approx_recip=approx_recip)

    const = lambda i: (0, 0)   # weights: same block every step -> no re-DMA

    out = pl.pallas_call(
        kernel,
        out_shape=jax.ShapeDtypeStruct((B * N, D), x.dtype),
        grid_spec=pltpu.PrefetchScalarGridSpec(
            num_scalar_prefetch=0,
            grid=(B // block_b,),
            in_specs=[
                pl.BlockSpec((rows, D), lambda i: (i, 0)),          # x slab
                pl.BlockSpec((rows, rows), const),                  # attn bias
                pl.BlockSpec((D, 3 * inner), const),                # W_qkv (scaled)
                pl.BlockSpec((inner, D), const),                    # W_out
                pl.BlockSpec((1, D), const),                        # ln1 gamma
                pl.BlockSpec((1, D), const),                        # ln1 beta
                pl.BlockSpec((1, D), const),                        # ln2 gamma
                pl.BlockSpec((1, D), const),                        # ln2 beta
                pl.BlockSpec((D, hidden), const),                   # W_ff1
                pl.BlockSpec((1, hidden), const),                   # b_ff1
                pl.BlockSpec((hidden, D), const),                   # W_ff2
                pl.BlockSpec((1, D), const),                        # b_ff2
            ],
            out_specs=pl.BlockSpec((rows, D), lambda i: (i, 0)),
        ),
        compiler_params=pltpu.CompilerParams(
            dimension_semantics=("parallel",)),
    )(x_flat, bias, wqkv, wout, g1, b1, g2, b2, wff1, bff1, wff2, bff2)
    return out.reshape(B, N, D)


# ---------------------------------------------------------------------------
# Pure-JAX references and the full-model forward (XLA everywhere except layers)
# ---------------------------------------------------------------------------
def transformer_layer_reference(x, p, *, n_heads, head_dim, eps=1e-5):
    B, N, D = x.shape
    inner = n_heads * head_dim
    xn = _layer_norm(x, p['ln1'][0], p['ln1'][1], eps)
    qkv = xn @ jnp.asarray(p['w_qkv']).T
    q, k, v = jnp.split(qkv, 3, axis=-1)

    def heads(t):
        return t.reshape(B, N, n_heads, head_dim).transpose(0, 2, 1, 3)

    q, k, v = map(heads, (q, k, v))
    dots = jnp.einsum('bhnd,bhmd->bhnm', q, k) * (head_dim ** -0.5)
    attn = jax.nn.softmax(dots, axis=-1)
    o = jnp.einsum('bhnm,bhmd->bhnd', attn, v)
    o = o.transpose(0, 2, 1, 3).reshape(B, N, inner)
    x = x + o @ jnp.asarray(p['w_out']).T
    xn2 = _layer_norm(x, p['ln2'][0], p['ln2'][1], eps)
    h = _gelu_tanh(xn2 @ jnp.asarray(p['w_ff1']).T + p['b_ff1'])
    return x + h @ jnp.asarray(p['w_ff2']).T + p['b_ff2']


def posemb_sincos_1d(n, d_model, temperature=10000.0):
    omega = jnp.arange(d_model // 2, dtype=jnp.float32) / (d_model // 2 - 1)
    omega = 1.0 / (temperature ** omega)
    angles = jnp.arange(n, dtype=jnp.float32)[:, None] * omega[None, :]
    return jnp.concatenate([jnp.sin(angles), jnp.cos(angles)], axis=1)


def model_forward(x, params, cfg, layer_fn, eps=1e-5):
    """Full TransformerFFTRegressor forward (eval, pooling='mean', layer_norm=True)."""
    B, n_inputs = x.shape
    n_patches, d_model = cfg['n_patches'], cfg['d_model']
    patch_size = n_inputs // n_patches

    fr = jnp.fft.fft(x)
    freqs = jnp.stack([jnp.real(fr), jnp.imag(fr)], axis=-1)         # (B, n_inputs, 2)

    xp = x.reshape(B, n_patches, patch_size)
    xp = _layer_norm(xp, params['patch_ln1'][0], params['patch_ln1'][1], eps)
    xp = xp @ params['patch_lin_w'].T + params['patch_lin_b']
    xp = _layer_norm(xp, params['patch_ln2'][0], params['patch_ln2'][1], eps)

    fp = freqs.reshape(B, n_patches, patch_size, 2).reshape(B, n_patches, 2 * patch_size)
    fp = _layer_norm(fp, params['freq_ln1'][0], params['freq_ln1'][1], eps)
    fp = fp @ params['freq_lin_w'].T + params['freq_lin_b']
    fp = _layer_norm(fp, params['freq_ln2'][0], params['freq_ln2'][1], eps)

    pe = posemb_sincos_1d(n_patches, d_model)
    tokens = jnp.concatenate([xp + pe, fp + pe], axis=1)             # (B, 2*n_patches, D)

    for lp in params['layers']:
        tokens = layer_fn(tokens, lp)
    tokens = _layer_norm(tokens, params['final_ln'][0], params['final_ln'][1], eps)

    pooled = jnp.mean(tokens, axis=1)                                # pooling='mean'
    pooled = _layer_norm(pooled, params['head_ln'][0], params['head_ln'][1], eps)
    out = pooled @ params['head_w'].T + params['head_b']
    return jnp.squeeze(out)


def init_params(key, *, n_inputs, n_outputs, n_patches, d_model, n_layers,
                n_heads, head_dim, feedforward_dim):
    patch_size = n_inputs // n_patches
    freq_patch_dim = 2 * patch_size
    inner = n_heads * head_dim
    kit = iter(jax.random.split(key, 64))

    def w(shape, std=0.05):
        return jax.random.normal(next(kit), shape, jnp.float32) * std

    def ln(dim):
        g = 1.0 + 0.1 * jax.random.normal(next(kit), (dim,), jnp.float32)
        b = 0.05 * jax.random.normal(next(kit), (dim,), jnp.float32)
        return (g, b)

    params = {
        'patch_ln1': ln(patch_size),
        'patch_lin_w': w((d_model, patch_size)),
        'patch_lin_b': w((d_model,)),
        'patch_ln2': ln(d_model),
        'freq_ln1': ln(freq_patch_dim),
        'freq_lin_w': w((d_model, freq_patch_dim)),
        'freq_lin_b': w((d_model,)),
        'freq_ln2': ln(d_model),
        'final_ln': ln(d_model),
        'head_ln': ln(d_model),
        'head_w': w((n_outputs, d_model)),
        'head_b': w((n_outputs,)),
        'layers': [],
    }
    for _ in range(n_layers):
        params['layers'].append({
            'ln1': ln(d_model),
            'w_qkv': w((3 * inner, d_model)),
            'w_out': w((d_model, inner)),
            'ln2': ln(d_model),
            'w_ff1': w((feedforward_dim, d_model)),
            'b_ff1': w((feedforward_dim,)),
            'w_ff2': w((d_model, feedforward_dim)),
            'b_ff2': w((d_model,)),
        })
    return params


if __name__ == "__main__":
    cfg = dict(n_inputs=32, n_outputs=1, n_patches=4, d_model=32, n_layers=2,
               n_heads=4, head_dim=8, feedforward_dim=64)
    n_heads, head_dim = cfg['n_heads'], cfg['head_dim']
    seq = 2 * cfg['n_patches']                                       # = 8 tokens

    key = jax.random.PRNGKey(0)
    k_params, k_tok2, k_tok4, k_raw = jax.random.split(key, 4)
    params = init_params(k_params, **cfg)
    lp0 = params['layers'][0]

    # --- fused-layer check, B=2, auto grid (1 step on v5e/v6e, 2 on v7x) ----
    x_tok = jax.random.normal(k_tok2, (2, seq, cfg['d_model']), jnp.float32)
    out_k = jax.block_until_ready(
        transformer_layer_forward(x_tok, lp0, n_heads=n_heads, head_dim=head_dim))
    out_r = transformer_layer_reference(x_tok, lp0, n_heads=n_heads, head_dim=head_dim)
    assert out_k.shape == out_r.shape
    assert jnp.allclose(out_k, out_r, atol=5e-3, rtol=5e-3), "layer kernel mismatch"

    # --- explicit multi-step path (grid=(2,), block_b=2) + exact softmax recip
    x_tok4 = jax.random.normal(k_tok4, (4, seq, cfg['d_model']), jnp.float32)
    out_k4 = jax.block_until_ready(
        transformer_layer_forward(x_tok4, lp0, n_heads=n_heads, head_dim=head_dim,
                                  block_b=2, approx_recip=False))
    out_r4 = transformer_layer_reference(x_tok4, lp0, n_heads=n_heads, head_dim=head_dim)
    assert jnp.allclose(out_k4, out_r4, atol=5e-3, rtol=5e-3), "multi-step mismatch"

    # --- full TransformerFFTRegressor forward: FFT/embeddings/head in XLA,
    #     all transformer layers through the fused Pallas kernel.
    x_raw = jax.random.normal(k_raw, (4, cfg['n_inputs']), jnp.float32)
    kernel_layer = functools.partial(transformer_layer_forward,
                                     n_heads=n_heads, head_dim=head_dim)
    ref_layer = functools.partial(transformer_layer_reference,
                                  n_heads=n_heads, head_dim=head_dim)
    y_k = jax.block_until_ready(model_forward(x_raw, params, cfg, kernel_layer))
    y_r = model_forward(x_raw, params, cfg, ref_layer)
    assert y_k.shape == (4,)
    assert jnp.allclose(y_k, y_r, atol=1e-2, rtol=1e-2), "full model mismatch"

    print("KERNEL_OK")
</pallas_src>

<mosaic_0001>
module attributes {stable_mosaic.version = 11 : i64} {
  func.func @_transformer_layer_kernel(%arg0: i32, %arg1: memref<16x32xf32, #tpu.memory_space<vmem>>, %arg2: memref<16x16xf32, #tpu.memory_space<vmem>>, %arg3: memref<32x96xf32, #tpu.memory_space<vmem>>, %arg4: memref<32x32xf32, #tpu.memory_space<vmem>>, %arg5: memref<1x32xf32, #tpu.memory_space<vmem>>, %arg6: memref<1x32xf32, #tpu.memory_space<vmem>>, %arg7: memref<1x32xf32, #tpu.memory_space<vmem>>, %arg8: memref<1x32xf32, #tpu.memory_space<vmem>>, %arg9: memref<32x64xf32, #tpu.memory_space<vmem>>, %arg10: memref<1x64xf32, #tpu.memory_space<vmem>>, %arg11: memref<64x32xf32, #tpu.memory_space<vmem>>, %arg12: memref<1x32xf32, #tpu.memory_space<vmem>>, %arg13: memref<16x32xf32, #tpu.memory_space<vmem>>) attributes {dimension_semantics = [#tpu.dimension_semantics<parallel>], iteration_bounds = array<i64: 1>, scalar_prefetch = 0 : i64, scratch_operands = 0 : i64, tpu.core_type = #tpu.core_type<tc>, window_params = [{transform_indices = @transform_0, window_bounds = array<i64: 16, 32>}, {pipeline_mode = #tpu.pipeline_mode<synchronous>, transform_indices = @transform_1, window_bounds = array<i64: 16, 16>}, {pipeline_mode = #tpu.pipeline_mode<synchronous>, transform_indices = @transform_2, window_bounds = array<i64: 32, 96>}, {pipeline_mode = #tpu.pipeline_mode<synchronous>, transform_indices = @transform_3, window_bounds = array<i64: 32, 32>}, {pipeline_mode = #tpu.pipeline_mode<synchronous>, transform_indices = @transform_4, window_bounds = array<i64: 1, 32>}, {pipeline_mode = #tpu.pipeline_mode<synchronous>, transform_indices = @transform_5, window_bounds = array<i64: 1, 32>}, {pipeline_mode = #tpu.pipeline_mode<synchronous>, transform_indices = @transform_6, window_bounds = array<i64: 1, 32>}, {pipeline_mode = #tpu.pipeline_mode<synchronous>, transform_indices = @transform_7, window_bounds = array<i64: 1, 32>}, {pipeline_mode = #tpu.pipeline_mode<synchronous>, transform_indices = @transform_8, window_bounds = array<i64: 32, 64>}, {pipeline_mode = #tpu.pipeline_mode<synchronous>, transform_indices = @transform_9, window_bounds = array<i64: 1, 64>}, {pipeline_mode = #tpu.pipeline_mode<synchronous>, transform_indices = @transform_10, window_bounds = array<i64: 64, 32>}, {pipeline_mode = #tpu.pipeline_mode<synchronous>, transform_indices = @transform_11, window_bounds = array<i64: 1, 32>}, {transform_indices = @transform_12, window_bounds = array<i64: 16, 32>}]} {
    %c0 = arith.constant 0 : index
    %c0_0 = arith.constant 0 : index
    %0 = vector.load %arg1[%c0, %c0_0] : memref<16x32xf32, #tpu.memory_space<vmem>>, vector<16x32xf32>
    %c0_1 = arith.constant 0 : index
    %c0_2 = arith.constant 0 : index
    %1 = vector.load %arg2[%c0_1, %c0_2] : memref<16x16xf32, #tpu.memory_space<vmem>>, vector<16x16xf32>
    %c0_3 = arith.constant 0 : index
    %c0_4 = arith.constant 0 : index
    %2 = vector.load %arg5[%c0_3, %c0_4] : memref<1x32xf32, #tpu.memory_space<vmem>>, vector<1x32xf32>
    %c0_5 = arith.constant 0 : index
    %c0_6 = arith.constant 0 : index
    %3 = vector.load %arg6[%c0_5, %c0_6] : memref<1x32xf32, #tpu.memory_space<vmem>>, vector<1x32xf32>
    %cst = arith.constant dense<0.000000e+00> : vector<16xf32>
    %4 = vector.multi_reduction <add>, %0, %cst [1] : vector<16x32xf32> to vector<16xf32>
    %5 = vector.shape_cast %4 : vector<16xf32> to vector<16x1xf32>
    %cst_7 = arith.constant 3.200000e+01 : f32
    %6 = vector.broadcast %cst_7 : f32 to vector<16x1xf32>
    %7 = arith.divf %5, %6 : vector<16x1xf32>
    %8 = vector.broadcast %7 : vector<16x1xf32> to vector<16x32xf32>
    %9 = arith.subf %0, %8 : vector<16x32xf32>
    %10 = arith.mulf %9, %9 : vector<16x32xf32>
    %cst_8 = arith.constant dense<0.000000e+00> : vector<16xf32>
    %11 = vector.multi_reduction <add>, %10, %cst_8 [1] : vector<16x32xf32> to vector<16xf32>
    %12 = vector.shape_cast %11 : vector<16xf32> to vector<16x1xf32>
    %cst_9 = arith.constant 3.200000e+01 : f32
    %13 = vector.broadcast %cst_9 : f32 to vector<16x1xf32>
    %14 = arith.divf %12, %13 : vector<16x1xf32>
    %15 = vector.broadcast %7 : vector<16x1xf32> to vector<16x32xf32>
    %16 = arith.subf %0, %15 : vector<16x32xf32>
    %cst_10 = arith.constant 9.99999974E-6 : f32
    %17 = vector.broadcast %cst_10 : f32 to vector<16x1xf32>
    %18 = arith.addf %14, %17 : vector<16x1xf32>
    %19 = math.rsqrt %18 : vector<16x1xf32>
    %20 = vector.broadcast %19 : vector<16x1xf32> to vector<16x32xf32>
    %21 = arith.mulf %16, %20 : vector<16x32xf32>
    %22 = vector.broadcast %2 : vector<1x32xf32> to vector<16x32xf32>
    %23 = arith.mulf %21, %22 : vector<16x32xf32>
    %24 = vector.broadcast %3 : vector<1x32xf32> to vector<16x32xf32>
    %25 = arith.addf %23, %24 : vector<16x32xf32>
    %c0_11 = arith.constant 0 : index
    %c0_12 = arith.constant 0 : index
    %26 = vector.load %arg3[%c0_11, %c0_12] : memref<32x96xf32, #tpu.memory_space<vmem>>, vector<32x96xf32>
    %cst_13 = arith.constant dense<0.000000e+00> : vector<16x96xf32>
    %27 = tpu.matmul %25, %26, %cst_13 {dimension_numbers = #tpu.dot_dimension_numbers<[1], [0], [0], [1], [0, 0, 1, 1], [], []>} : vector<16x32xf32>, vector<32x96xf32>, vector<16x96xf32> -> vector<16x96xf32>
    %28 = vector.extract_strided_slice %27 {offsets = [0, 0], sizes = [16, 8], strides = [1, 1]} : vector<16x96xf32> to vector<16x8xf32>
    %29 = vector.extract_strided_slice %27 {offsets = [0, 32], sizes = [16, 8], strides = [1, 1]} : vector<16x96xf32> to vector<16x8xf32>
    %30 = vector.extract_strided_slice %27 {offsets = [0, 64], sizes = [16, 8], strides = [1, 1]} : vector<16x96xf32> to vector<16x8xf32>
    %cst_14 = arith.constant dense<0.000000e+00> : vector<16x16xf32>
    %31 = tpu.matmul %28, %29, %cst_14 {dimension_numbers = #tpu.dot_dimension_numbers<[1], [1], [0], [0], [0, 0, 1, 0], [], []>} : vector<16x8xf32>, vector<16x8xf32>, vector<16x16xf32> -> vector<16x16xf32>
    %32 = arith.addf %31, %1 : vector<16x16xf32>
    %cst_15 = arith.constant dense<0xFF800000> : vector<16xf32>
    %33 = vector.multi_reduction <maximumf>, %32, %cst_15 [1] : vector<16x16xf32> to vector<16xf32>
    %34 = vector.shape_cast %33 : vector<16xf32> to vector<16x1xf32>
    %35 = vector.broadcast %34 : vector<16x1xf32> to vector<16x16xf32>
    %36 = arith.subf %32, %35 : vector<16x16xf32>
    %37 = math.exp %36 : vector<16x16xf32>
    %cst_16 = arith.constant dense<0.000000e+00> : vector<16xf32>
    %38 = vector.multi_reduction <add>, %37, %cst_16 [1] : vector<16x16xf32> to vector<16xf32>
    %39 = vector.shape_cast %38 : vector<16xf32> to vector<16x1xf32>
    %40 = tpu.reciprocal %39 {approx = true} : vector<16x1xf32> -> vector<16x1xf32>
    %41 = vector.broadcast %40 : vector<16x1xf32> to vector<16x16xf32>
    %42 = arith.mulf %37, %41 : vector<16x16xf32>
    %cst_17 = arith.constant dense<0.000000e+00> : vector<16x8xf32>
    %43 = tpu.matmul %42, %30, %cst_17 {dimension_numbers = #tpu.dot_dimension_numbers<[1], [0], [0], [1], [0, 0, 1, 1], [], []>} : vector<16x16xf32>, vector<16x8xf32>, vector<16x8xf32> -> vector<16x8xf32>
    %44 = vector.extract_strided_slice %27 {offsets = [0, 8], sizes = [16, 8], strides = [1, 1]} : vector<16x96xf32> to vector<16x8xf32>
    %45 = vector.extract_strided_slice %27 {offsets = [0, 40], sizes = [16, 8], strides = [1, 1]} : vector<16x96xf32> to vector<16x8xf32>
    %46 = vector.extract_strided_slice %27 {offsets = [0, 72], sizes = [16, 8], strides = [1, 1]} : vector<16x96xf32> to vector<16x8xf32>
    %cst_18 = arith.constant dense<0.000000e+00> : vector<16x16xf32>
    %47 = tpu.matmul %44, %45, %cst_18 {dimension_numbers = #tpu.dot_dimension_numbers<[1], [1], [0], [0], [0, 0, 1, 0], [], []>} : vector<16x8xf32>, vector<16x8xf32>, vector<16x16xf32> -> vector<16x16xf32>
    %48 = arith.addf %47, %1 : vector<16x16xf32>
    %cst_19 = arith.constant dense<0xFF800000> : vector<16xf32>
    %49 = vector.multi_reduction <maximumf>, %48, %cst_19 [1] : vector<16x16xf32> to vector<16xf32>
    %50 = vector.shape_cast %49 : vector<16xf32> to vector<16x1xf32>
    %51 = vector.broadcast %50 : vector<16x1xf32> to vector<16x16xf32>
    %52 = arith.subf %48, %51 : vector<16x16xf32>
    %53 = math.exp %52 : vector<16x16xf32>
    %cst_20 = arith.constant dense<0.000000e+00> : vector<16xf32>
    %54 = vector.multi_reduction <add>, %53, %cst_20 [1] : vector<16x16xf32> to vector<16xf32>
    %55 = vector.shape_cast %54 : vector<16xf32> to vector<16x1xf32>
    %56 = tpu.reciprocal %55 {approx = true} : vector<16x1xf32> -> vector<16x1xf32>
    %57 = vector.broadcast %56 : vector<16x1xf32> to vector<16x16xf32>
    %58 = arith.mulf %53, %57 : vector<16x16xf32>
    %cst_21 = arith.constant dense<0.000000e+00> : vector<16x8xf32>
    %59 = tpu.matmul %58, %46, %cst_21 {dimension_numbers = #tpu.dot_dimension_numbers<[1], [0], [0], [1], [0, 0, 1, 1], [], []>} : vector<16x16xf32>, vector<16x8xf32>, vector<16x8xf32> -> vector<16x8xf32>
    %60 = vector.extract_strided_slice %27 {offsets = [0, 16], sizes = [16, 8], strides = [1, 1]} : vector<16x96xf32> to vector<16x8xf32>
    %61 = vector.extract_strided_slice %27 {offsets = [0, 48], sizes = [16, 8], strides = [1, 1]} : vector<16x96xf32> to vector<16x8xf32>
    %62 = vector.extract_strided_slice %27 {offsets = [0, 80], sizes = [16, 8], strides = [1, 1]} : vector<16x96xf32> to vector<16x8xf32>
    %cst_22 = arith.constant dense<0.000000e+00> : vector<16x16xf32>
    %63 = tpu.matmul %60, %61, %cst_22 {dimension_numbers = #tpu.dot_dimension_numbers<[1], [1], [0], [0], [0, 0, 1, 0], [], []>} : vector<16x8xf32>, vector<16x8xf32>, vector<16x16xf32> -> vector<16x16xf32>
    %64 = arith.addf %63, %1 : vector<16x16xf32>
    %cst_23 = arith.constant dense<0xFF800000> : vector<16xf32>
    %65 = vector.multi_reduction <maximumf>, %64, %cst_23 [1] : vector<16x16xf32> to vector<16xf32>
    %66 = vector.shape_cast %65 : vector<16xf32> to vector<16x1xf32>
    %67 = vector.broadcast %66 : vector<16x1xf32> to vector<16x16xf32>
    %68 = arith.subf %64, %67 : vector<16x16xf32>
    %69 = math.exp %68 : vector<16x16xf32>
    %cst_24 = arith.constant dense<0.000000e+00> : vector<16xf32>
    %70 = vector.multi_reduction <add>, %69, %cst_24 [1] : vector<16x16xf32> to vector<16xf32>
    %71 = vector.shape_cast %70 : vector<16xf32> to vector<16x1xf32>
    %72 = tpu.reciprocal %71 {approx = true} : vector<16x1xf32> -> vector<16x1xf32>
    %73 = vector.broadcast %72 : vector<16x1xf32> to vector<16x16xf32>
    %74 = arith.mulf %69, %73 : vector<16x16xf32>
    %cst_25 = arith.constant dense<0.000000e+00> : vector<16x8xf32>
    %75 = tpu.matmul %74, %62, %cst_25 {dimension_numbers = #tpu.dot_dimension_numbers<[1], [0], [0], [1], [0, 0, 1, 1], [], []>} : vector<16x16xf32>, vector<16x8xf32>, vector<16x8xf32> -> vector<16x8xf32>
    %76 = vector.extract_strided_slice %27 {offsets = [0, 24], sizes = [16, 8], strides = [1, 1]} : vector<16x96xf32> to vector<16x8xf32>
    %77 = vector.extract_strided_slice %27 {offsets = [0, 56], sizes = [16, 8], strides = [1, 1]} : vector<16x96xf32> to vector<16x8xf32>
    %78 = vector.extract_strided_slice %27 {offsets = [0, 88], sizes = [16, 8], strides = [1, 1]} : vector<16x96xf32> to vector<16x8xf32>
    %cst_26 = arith.constant dense<0.000000e+00> : vector<16x16xf32>
    %79 = tpu.matmul %76, %77, %cst_26 {dimension_numbers = #tpu.dot_dimension_numbers<[1], [1], [0], [0], [0, 0, 1, 0], [], []>} : vector<16x8xf32>, vector<16x8xf32>, vector<16x16xf32> -> vector<16x16xf32>
    %80 = arith.addf %79, %1 : vector<16x16xf32>
    %cst_27 = arith.constant dense<0xFF800000> : vector<16xf32>
    %81 = vector.multi_reduction <maximumf>, %80, %cst_27 [1] : vector<16x16xf32> to vector<16xf32>
    %82 = vector.shape_cast %81 : vector<16xf32> to vector<16x1xf32>
    %83 = vector.broadcast %82 : vector<16x1xf32> to vector<16x16xf32>
    %84 = arith.subf %80, %83 : vector<16x16xf32>
    %85 = math.exp %84 : vector<16x16xf32>
    %cst_28 = arith.constant dense<0.000000e+00> : vector<16xf32>
    %86 = vector.multi_reduction <add>, %85, %cst_28 [1] : vector<16x16xf32> to vector<16xf32>
    %87 = vector.shape_cast %86 : vector<16xf32> to vector<16x1xf32>
    %88 = tpu.reciprocal %87 {approx = true} : vector<16x1xf32> -> vector<16x1xf32>
    %89 = vector.broadcast %88 : vector<16x1xf32> to vector<16x16xf32>
    %90 = arith.mulf %85, %89 : vector<16x16xf32>
    %cst_29 = arith.constant dense<0.000000e+00> : vector<16x8xf32>
    %91 = tpu.matmul %90, %78, %cst_29 {dimension_numbers = #tpu.dot_dimension_numbers<[1], [0], [0], [1], [0, 0, 1, 1], [], []>} : vector<16x16xf32>, vector<16x8xf32>, vector<16x8xf32> -> vector<16x8xf32>
    %92 = tpu.concatenate %43, %59, %75, %91 in 1 : vector<16x8xf32>, vector<16x8xf32>, vector<16x8xf32>, vector<16x8xf32> -> vector<16x32xf32>
    %c0_30 = arith.constant 0 : index
    %c0_31 = arith.constant 0 : index
    %93 = vector.load %arg4[%c0_30, %c0_31] : memref<32x32xf32, #tpu.memory_space<vmem>>, vector<32x32xf32>
    %cst_32 = arith.constant dense<0.000000e+00> : vector<16x32xf32>
    %94 = tpu.matmul %92, %93, %cst_32 {dimension_numbers = #tpu.dot_dimension_numbers<[1], [0], [0], [1], [0, 0, 1, 1], [], []>} : vector<16x32xf32>, vector<32x32xf32>, vector<16x32xf32> -> vector<16x32xf32>
    %95 = arith.addf %0, %94 : vector<16x32xf32>
    %c0_33 = arith.constant 0 : index
    %c0_34 = arith.constant 0 : index
    %96 = vector.load %arg7[%c0_33, %c0_34] : memref<1x32xf32, #tpu.memory_space<vmem>>, vector<1x32xf32>
    %c0_35 = arith.constant 0 : index
    %c0_36 = arith.constant 0 : index
    %97 = vector.load %arg8[%c0_35, %c0_36] : memref<1x32xf32, #tpu.memory_space<vmem>>, vector<1x32xf32>
    %cst_37 = arith.constant dense<0.000000e+00> : vector<16xf32>
    %98 = vector.multi_reduction <add>, %95, %cst_37 [1] : vector<16x32xf32> to vector<16xf32>
    %99 = vector.shape_cast %98 : vector<16xf32> to vector<16x1xf32>
    %cst_38 = arith.constant 3.200000e+01 : f32
    %100 = vector.broadcast %cst_38 : f32 to vector<16x1xf32>
    %101 = arith.divf %99, %100 : vector<16x1xf32>
    %102 = vector.broadcast %101 : vector<16x1xf32> to vector<16x32xf32>
    %103 = arith.subf %95, %102 : vector<16x32xf32>
    %104 = arith.mulf %103, %103 : vector<16x32xf32>
    %cst_39 = arith.constant dense<0.000000e+00> : vector<16xf32>
    %105 = vector.multi_reduction <add>, %104, %cst_39 [1] : vector<16x32xf32> to vector<16xf32>
    %106 = vector.shape_cast %105 : vector<16xf32> to vector<16x1xf32>
    %cst_40 = arith.constant 3.200000e+01 : f32
    %107 = vector.broadcast %cst_40 : f32 to vector<16x1xf32>
    %108 = arith.divf %106, %107 : vector<16x1xf32>
    %109 = vector.broadcast %101 : vector<16x1xf32> to vector<16x32xf32>
    %110 = arith.subf %95, %109 : vector<16x32xf32>
    %cst_41 = arith.constant 9.99999974E-6 : f32
    %111 = vector.broadcast %cst_41 : f32 to vector<16x1xf32>
    %112 = arith.addf %108, %111 : vector<16x1xf32>
    %113 = math.rsqrt %112 : vector<16x1xf32>
    %114 = vector.broadcast %113 : vector<16x1xf32> to vector<16x32xf32>
    %115 = arith.mulf %110, %114 : vector<16x32xf32>
    %116 = vector.broadcast %96 : vector<1x32xf32> to vector<16x32xf32>
    %117 = arith.mulf %115, %116 : vector<16x32xf32>
    %118 = vector.broadcast %97 : vector<1x32xf32> to vector<16x32xf32>
    %119 = arith.addf %117, %118 : vector<16x32xf32>
    %c0_42 = arith.constant 0 : index
    %c0_43 = arith.constant 0 : index
    %120 = vector.load %arg9[%c0_42, %c0_43] : memref<32x64xf32, #tpu.memory_space<vmem>>, vector<32x64xf32>
    %cst_44 = arith.constant dense<0.000000e+00> : vector<16x64xf32>
    %121 = tpu.matmul %119, %120, %cst_44 {dimension_numbers = #tpu.dot_dimension_numbers<[1], [0], [0], [1], [0, 0, 1, 1], [], []>} : vector<16x32xf32>, vector<32x64xf32>, vector<16x64xf32> -> vector<16x64xf32>
    %c0_45 = arith.constant 0 : index
    %c0_46 = arith.constant 0 : index
    %122 = vector.load %arg10[%c0_45, %c0_46] : memref<1x64xf32, #tpu.memory_space<vmem>>, vector<1x64xf32>
    %123 = vector.broadcast %122 : vector<1x64xf32> to vector<16x64xf32>
    %124 = arith.addf %121, %123 : vector<16x64xf32>
    %cst_47 = arith.constant 5.000000e-01 : f32
    %125 = vector.broadcast %cst_47 : f32 to vector<16x64xf32>
    %126 = arith.mulf %125, %124 : vector<16x64xf32>
    %cst_48 = arith.constant 4.471500e-02 : f32
    %127 = vector.broadcast %cst_48 : f32 to vector<16x64xf32>
    %128 = arith.mulf %127, %124 : vector<16x64xf32>
    %129 = arith.mulf %128, %124 : vector<16x64xf32>
    %130 = arith.mulf %129, %124 : vector<16x64xf32>
    %131 = arith.addf %124, %130 : vector<16x64xf32>
    %cst_49 = arith.constant 0.797884583 : f32
    %132 = vector.broadcast %cst_49 : f32 to vector<16x64xf32>
    %133 = arith.mulf %132, %131 : vector<16x64xf32>
    %134 = math.tanh %133 : vector<16x64xf32>
    %cst_50 = arith.constant 1.000000e+00 : f32
    %135 = vector.broadcast %cst_50 : f32 to vector<16x64xf32>
    %136 = arith.addf %135, %134 : vector<16x64xf32>
    %137 = arith.mulf %126, %136 : vector<16x64xf32>
    %c0_51 = arith.constant 0 : index
    %c0_52 = arith.constant 0 : index
    %138 = vector.load %arg11[%c0_51, %c0_52] : memref<64x32xf32, #tpu.memory_space<vmem>>, vector<64x32xf32>
    %cst_53 = arith.constant dense<0.000000e+00> : vector<16x32xf32>
    %139 = tpu.matmul %137, %138, %cst_53 {dimension_numbers = #tpu.dot_dimension_numbers<[1], [0], [0], [1], [0, 0, 1, 1], [], []>} : vector<16x64xf32>, vector<64x32xf32>, vector<16x32xf32> -> vector<16x32xf32>
    %c0_54 = arith.constant 0 : index
    %c0_55 = arith.constant 0 : index
    %140 = vector.load %arg12[%c0_54, %c0_55] : memref<1x32xf32, #tpu.memory_space<vmem>>, vector<1x32xf32>
    %141 = vector.broadcast %140 : vector<1x32xf32> to vector<16x32xf32>
    %142 = arith.addf %139, %141 : vector<16x32xf32>
    %143 = arith.addf %95, %142 : vector<16x32xf32>
    %c0_56 = arith.constant 0 : index
    %c0_57 = arith.constant 0 : index
    %144 = vector.load %arg13[%c0_56, %c0_57] : memref<16x32xf32, #tpu.memory_space<vmem>>, vector<16x32xf32>
    tpu.vector_store %arg13[%c0_56, %c0_57], %143 {strides = array<i32>} : memref<16x32xf32, #tpu.memory_space<vmem>>, vector<16x32xf32>,
    return
  }
  func.func @transform_0(%arg0: i32) -> (i32, i32) {
    %c0_i32 = arith.constant 0 : i32
    %c0_i32_0 = arith.constant 0 : i32
    return %arg0, %c0_i32 : i32, i32
  }
  func.func @transform_1(%arg0: i32) -> (i32, i32) {
    %c0_i32 = arith.constant 0 : i32
    %c0_i32_0 = arith.constant 0 : i32
    %c0_i32_1 = arith.constant 0 : i32
    return %c0_i32, %c0_i32_0 : i32, i32
  }
  func.func @transform_2(%arg0: i32) -> (i32, i32) {
    %c0_i32 = arith.constant 0 : i32
    %c0_i32_0 = arith.constant 0 : i32
    %c0_i32_1 = arith.constant 0 : i32
    return %c0_i32, %c0_i32_0 : i32, i32
  }
  func.func @transform_3(%arg0: i32) -> (i32, i32) {
    %c0_i32 = arith.constant 0 : i32
    %c0_i32_0 = arith.constant 0 : i32
    %c0_i32_1 = arith.constant 0 : i32
    return %c0_i32, %c0_i32_0 : i32, i32
  }
  func.func @transform_4(%arg0: i32) -> (i32, i32) {
    %c0_i32 = arith.constant 0 : i32
    %c0_i32_0 = arith.constant 0 : i32
    %c0_i32_1 = arith.constant 0 : i32
    return %c0_i32, %c0_i32_0 : i32, i32
  }
  func.func @transform_5(%arg0: i32) -> (i32, i32) {
    %c0_i32 = arith.constant 0 : i32
    %c0_i32_0 = arith.constant 0 : i32
    %c0_i32_1 = arith.constant 0 : i32
    return %c0_i32, %c0_i32_0 : i32, i32
  }
  func.func @transform_6(%arg0: i32) -> (i32, i32) {
    %c0_i32 = arith.constant 0 : i32
    %c0_i32_0 = arith.constant 0 : i32
    %c0_i32_1 = arith.constant 0 : i32
    return %c0_i32, %c0_i32_0 : i32, i32
  }
  func.func @transform_7(%arg0: i32) -> (i32, i32) {
    %c0_i32 = arith.constant 0 : i32
    %c0_i32_0 = arith.constant 0 : i32
    %c0_i32_1 = arith.constant 0 : i32
    return %c0_i32, %c0_i32_0 : i32, i32
  }
  func.func @transform_8(%arg0: i32) -> (i32, i32) {
    %c0_i32 = arith.constant 0 : i32
    %c0_i32_0 = arith.constant 0 : i32
    %c0_i32_1 = arith.constant 0 : i32
    return %c0_i32, %c0_i32_0 : i32, i32
  }
  func.func @transform_9(%arg0: i32) -> (i32, i32) {
    %c0_i32 = arith.constant 0 : i32
    %c0_i32_0 = arith.constant 0 : i32
    %c0_i32_1 = arith.constant 0 : i32
    return %c0_i32, %c0_i32_0 : i32, i32
  }
  func.func @transform_10(%arg0: i32) -> (i32, i32) {
    %c0_i32 = arith.constant 0 : i32
    %c0_i32_0 = arith.constant 0 : i32
    %c0_i32_1 = arith.constant 0 : i32
    return %c0_i32, %c0_i32_0 : i32, i32
  }
  func.func @transform_11(%arg0: i32) -> (i32, i32) {
    %c0_i32 = arith.constant 0 : i32
    %c0_i32_0 = arith.constant 0 : i32
    %c0_i32_1 = arith.constant 0 : i32
    return %c0_i32, %c0_i32_0 : i32, i32
  }
  func.func @transform_12(%arg0: i32) -> (i32, i32) {
    %c0_i32 = arith.constant 0 : i32
    %c0_i32_0 = arith.constant 0 : i32
    return %arg0, %c0_i32 : i32, i32
  }
}

</mosaic_0001>

<bundles_post_ra>
// kernel: tpu_custom_call.1
= control target key start
LH: loop header
LB: loop body
LE: loop exit
PB: predicated region body
PF: predicated region fallthrough
CT: control target
= control target key end

     0   :  { %17 = vsyncpa [#allocation3], 0  ;;  %s2206_s0 = inlined_call_operand.hbm [shape: f32[16,32], index: 0, kind: input, shape index: {}]   ;;  %s2207_s1 = inlined_call_operand.hbm [shape: f32[16,16], index: 1, kind: input, shape index: {}]   ;;  %s2208_s2 = inlined_call_operand.vmem [shape: f32[32,96], index: 2, kind: input, shape index: {}]   ;;  %s2209_s3 = inlined_call_operand.vmem [shape: f32[32,32], index: 3, kind: input, shape index: {}]   ;;  %s2210_s4 = inlined_call_operand.vmem [shape: f32[1,32], index: 4, kind: input, shape index: {}]   ;;  %s2211_s5 = inlined_call_operand.vmem [shape: f32[1,32], index: 5, kind: input, shape index: {}]   ;;  %s2212_s6 = inlined_call_operand.vmem [shape: f32[1,32], index: 6, kind: input, shape index: {}]   ;;  %s2213_s7 = inlined_call_operand.vmem [shape: f32[1,32], index: 7, kind: input, shape index: {}]   ;;  %s2214_s8 = inlined_call_operand.vmem [shape: f32[32,64], index: 8, kind: input, shape index: {}]   ;;  %s2215_s9 = inlined_call_operand.vmem [shape: f32[1,64], index: 9, kind: input, shape index: {}]   ;;  %s2216_s10 = inlined_call_operand.vmem [shape: f32[64,32], index: 10, kind: input, shape index: {}]   ;;  %s2217_s11 = inlined_call_operand.vmem [shape: f32[1,32], index: 11, kind: input, shape index: {}]   ;;  %s2218_s12 = inlined_call_operand.hbm [shape: f32[16,32], index: 12, kind: output, shape index: {}]  }
   0x1   :  { %18 = vsyncpa [#allocation6], 0 }
   0x2   :  { %19 = vsyncpa [#allocation4], 0  ;;  %s1856_s21 = smov [#allocation2]   ;;  %s1784_s25 = scalar_lea.hbm %s2206_s0, 256 }
   0x3   :  { %s25_s22 = sshll.u32 %s1856_s21, 4  ;;  %p1785_p0 = scmp.ne.s32.totalorder %s2206_s0, %s1784_s25  ;;  %s26_s22 = int_to_ptr.vmem [resolvable:$true] %s25_s22 }
   0x4   :  { %p1788_p1 = scmp.lt.u32.totalorder %s1784_s25, %s2206_s0 }
   0x6   :  { %p1790_p2 = pnand %p1788_p1, %p1785_p0 }
   0x8   :  { %1793 = shalt.err (!%p1790_p2)
}
   0x9   :  { %s1794_s30 = scalar_lea.vmem %s26_s22, 256  ;;  %p1799_p4 = scmp.lt.s32.totalorder %s26_s22, %s26_s22 }
   0xa   :  { %p1795_p3 = scmp.ne.s32.totalorder %s26_s22, %s1794_s30  ;;  %p1800_p5 = scmp.lt.s32.totalorder %s1794_s30, %s1794_s30 }
   0xc   :  { %p1801_p6 = por %p1800_p5, %p1799_p4 }
   0xe   :  { %p1802_p7 = pnand %p1801_p6, %p1795_p3 }
  0x10   :  { %1805 = shalt.err (!%p1802_p7)
}
  0x11   :  { %s1857_s13 = smov 128   ;;  %s1858_s14 = smov 8  }
  0x12   :  { %31 = dma.hbm_to_vmem [thread:$0]  %s2206_s0, 256, %s26_s22, [#allocation3], %s1857_s13, %s1857_s13, %s1858_s14  }
  0x13   :  { %s1859_s17 = smov [#allocation5]   ;;  %s1806_s21 = scalar_lea.hbm %s2207_s1, 256 }
  0x14   :  { %s37_s18 = sshll.u32 %s1859_s17, 4  ;;  %p1807_p8 = scmp.ne.s32.totalorder %s2207_s1, %s1806_s21  ;;  %s38_s18 = int_to_ptr.vmem [resolvable:$true] %s37_s18 }
  0x15   :  { %p1810_p9 = scmp.lt.u32.totalorder %s1806_s21, %s2207_s1 }
  0x17   :  { %p1812_p10 = pnand %p1810_p9, %p1807_p8 }
  0x19   :  { %1815 = shalt.err (!%p1812_p10)
}
  0x1a   :  { %s1816_s27 = scalar_lea.vmem %s38_s18, 256  ;;  %p1821_p12 = scmp.lt.s32.totalorder %s38_s18, %s38_s18 }
  0x1b   :  { %p1817_p11 = scmp.ne.s32.totalorder %s38_s18, %s1816_s27  ;;  %p1822_p13 = scmp.lt.s32.totalorder %s1816_s27, %s1816_s27 }
  0x1d   :  { %p1823_p0 = por %p1822_p13, %p1821_p12 }
  0x1f   :  { %p1824_p1 = pnand %p1823_p0, %p1817_p11 }
  0x21   :  { %1827 = shalt.err (!%p1824_p1)
}
  0x22   :  { %43 = dma.hbm_to_vmem [thread:$0]  %s2207_s1, 256, %s38_s18, [#allocation6], %s1857_s13, %s1857_s13, %s1858_s14  }
  0x23   :  { %1850 = dma.done.wait [#allocation3], 256  }
  0x24   :  { %1851 = vsyncadd [#allocation3], 4294967040 }
  0x25   :  { %1852 = dma.done.wait [#allocation6], 256  }
  0x26   :  { %1853 = vsyncadd [#allocation6], 4294967040  ;;  %vm76_vm0 = vcmask 261120   ;;  %v1969_v0 = vld [vmem:[#allocation2] sm:$0xff]  ;;  %v1971_v1 = vld [vmem:[#allocation2 + $0x8] sm:$0xff]  ;;  %vm211_vm1 = vcmask 64512  }
  0x27   :  { %v77_v2 = vsel %vm76_vm0, %v1969_v0, 0.0  ;;  %v80_v3 = vsel %vm76_vm0, %v1971_v1, 0.0  ;;  %v120_v14 = vld [vmem:[%s2208_s2] sm:$0xff]  ;;  %v121_v15 = vld [vmem:[%s2208_s2 + $0x8] sm:$0xff]  ;;  %v122_v16 = vld [vmem:[%s2208_s2 + $0x10] sm:$0xff]  ;;  %s1862_s23 = smov 120  }
  0x28   :  { %78 = vadd.xlane.f32.xlu0 %v77_v2  ;;  %v1602_v17 = vpack.c.bf16 %v121_v15, %v120_v14  ;;  %v123_v18 = vld [vmem:[%s2208_s2 + $0x18] sm:$0xff]  ;;  %v1396_v27 = vld [vmem:[%s2210_s4] ss:$0 sm:$0xff]  ;;  %s1860_s4 = smov 88   ;;  %vm2017_vm2 = vmpackc.low %vm211_vm1, %vm211_vm1  ;;  %vm295_vm3 = vcmask 130048   ;;  %s1863_s24 = smov 56  }
  0x29   :  { %v1606_v19 = vpack.c.bf16 %v123_v18, %v122_v16  ;;  %v1397_v29 = vld [vmem:[%s2211_s5] ss:$0 sm:$0xff]  ;;  %s1861_s5 = smov 96   ;;  %v2033_v50 = vld [vmem:[#allocation5 + $0x8] sm:$0xff]  ;;  %v2035_v51 = vld [vmem:[#allocation5] sm:$0xff]  ;;  %s1864_s25 = smov 64  }
  0x2a   :  { %1603 = vmatprep.subr.bf16.mxu1 %v1602_v17  ;;  %s1865_s26 = smov 80   ;;  %s1866_s27 = smov 112   ;;  %vm1033_vm4 = vcmask 195584   ;;  %vm1292_vm5 = vcmask 523264  }
  0x2b   :  { %1605 = vmatpush3.bf16.msra.mxu1 %v1602_v17  ;;  %s1867_s0 = smov 48   ;;  %s1868_s22 = smov 104  }
  0x2c   :  { %81 = vadd.xlane.f32.xlu0 %v80_v3  ;;  %1607 = vmatprep.subr.bf16.mxu1 %v1606_v19  ;;  %s1869_s1 = smov 72   ;;  %s1870_s28 = smov 40  }
  0x2d   :  { %s1871_s29 = smov 16   ;;  %s1872_s21 = smov 24  }
  0x2f   :  { %1609 = vmatpush3.bf16.msra.mxu1 %v1606_v19 }
  0xb5   :  { %v79_v4 = vpop.xlane.xlu0 %78 }
  0xb6   :  { %v84_v5 = vmul.f32 0.03125, %v79_v4 }
  0xb8   :  { %v86_v6 = vsub.f32 %v1969_v0, %v84_v5 }
  0xb9   :  { %v82_v7 = vpop.xlane.xlu0 %81 }
  0xba   :  { %v85_v8 = vmul.f32 0.03125, %v82_v7  ;;  %v88_v9 = vmul.f32 %v86_v6, %v86_v6 }
  0xbc   :  { %v87_v10 = vsub.f32 %v1971_v1, %v85_v8  ;;  %v90_v11 = vsel %vm76_vm0, %v88_v9, 0.0 }
  0xbd   :  { %91 = vadd.xlane.f32.xlu1 %v90_v11 }
  0xbe   :  { %v89_v12 = vmul.f32 %v87_v10, %v87_v10 }
  0xc0   :  { %v93_v13 = vsel %vm76_vm0, %v89_v12, 0.0 }
  0xc1   :  { %94 = vadd.xlane.f32.xlu1 %v93_v13 }
 0x14a   :  { %v92_v20 = vpop.xlane.xlu1 %91 }
 0x14b   :  { %v96_v21 = vmul.f32 0.03125, %v92_v20 }
 0x14d   :  { %v98_v22 = vadd.f32 1e-05, %v96_v21 }
 0x14e   :  { %v95_v23 = vpop.xlane.xlu1 %94 }
 0x14f   :  { %1740 = vrsqrt.f32 %v98_v22  ;;  %v97_v24 = vmul.f32 0.03125, %v95_v23 }
 0x151   :  { %v99_v25 = vadd.f32 1e-05, %v97_v24 }
 0x153   :  { %1742 = vrsqrt.f32 %v99_v25 }
 0x159   :  { %v1741_v26 = vpop.eup %1740 }
 0x15a   :  { %v102_v28 = vmul.f32 %v1741_v26, %v86_v6 }
 0x15c   :  { %v110_v30 = vmul.f32 %v1396_v27, %v102_v28 }
 0x15d   :  { %v1743_v31 = vpop.eup %1742 }
 0x15e   :  { %v103_v32 = vmul.f32 %v1743_v31, %v87_v10  ;;  %v118_v33 = vadd.f32 %v1397_v29, %v110_v30 }
 0x160   :  { %v111_v34 = vmul.f32 %v1396_v27, %v103_v32  ;;  %1502 = vmatprep.mubr.msk.f32.mxu1 %vm76_vm0, %v118_v33 }
 0x162   :  { %v119_v35 = vadd.f32 %v1397_v29, %v111_v34 }
 0x164   :  { %1503 = vmatmul.mubr.msk.f32.vlgmr.msra.gmra.mrb[0].mxu1 %vm76_vm0, %v119_v35 }
 0x237   :  { %v2001_v36 = vpop.f32.mrb[0].mxu1 }
 0x238   :  { %v2003_v37 = vpop.f32.mrb[1].mxu1 }
 0x239   :  { %1509 = vmatprep.mubr.msk.f32.mxu1 %vm211_vm1, %v2003_v37  ;;  %v2009_v38 = vpack.i.bf16 %v2001_v36, %v2003_v37 }
 0x23b   :  { %1706 = vrot.lane.b32.xlu1 %v2009_v38, %s1860_s4  ;;  %1701 = vrot.lane.b32.xlu0 %v2009_v38, %s1861_s5 }
 0x23f   :  { %405 = vrot.lane.b32.xlu1 %v2003_v37, %s1862_s23 }
 0x243   :  { %407 = vrot.lane.b32.xlu1 %v2001_v36, %s1862_s23 }
 0x2ad   :  { %v1707_v39 = vpop.permute.xlu1 %1706  ;;  %v1702_v40 = vpop.permute.xlu0 %1701 }
 0x2ae   :  { %v1709_v41 = vunpack.i.h.bf16 %v1707_v39  ;;  %v1708_v42 = vunpack.i.l.bf16 %v1707_v39  ;;  %v1704_v43 = vunpack.i.h.bf16 %v1702_v40  ;;  %v1703_v44 = vunpack.i.l.bf16 %v1702_v40 }
 0x2b0   :  { %v1610_v46 = vpack.c.bf16 %v1704_v43, %v1703_v44  ;;  %v1620_v47 = vpack.c.bf16 %v1709_v41, %v1708_v42 }
 0x2b1   :  { %v406_v48 = vpop.permute.xlu1 %405 }
 0x2b2   :  { %1612 = vmatprep.subr.msk.bf16.mxu1 %vm2017_vm2, %v1610_v46 }
 0x2b3   :  { %1615 = vmatpush3.bf16.xpose.msk.msra.mxu1 %vm2017_vm2, %v1610_v46 }
 0x2b4   :  { %1622 = vmatprep.subr.msk.bf16.mxu1 %vm2017_vm2, %v1620_v47 }
 0x2b5   :  { %v408_v49 = vpop.permute.xlu1 %407 }
 0x2ba   :  { %1510 = vmatmul.mubr.msk.f32.vlgmr.msra.gmra.mrb[2].mxu1 %vm211_vm1, %v2001_v36 }
 0x2bb   :  { %1625 = vmatpush3.bf16.xpose.msk.msra.mxu1 %vm2017_vm2, %v1620_v47  ;;  %1523 = vmatprep.mubr.msk.f32.mxu1 %vm211_vm1, %v406_v48 }
 0x2c2   :  { %1524 = vmatmul.mubr.msk.f32.vlgmr.msra.gmra.mrb[4].mxu1 %vm211_vm1, %v408_v49 }
 0x38d   :  { %v1511_v52 = vpop.f32.mrb[2].mxu1 }
 0x38e   :  { %v292_v53 = vadd.f32 %v1511_v52, %v2033_v50  ;;  %v286_v54 = vpop.f32.mrb[3].mxu1 }
 0x38f   :  { %v287_v55 = vadd.f32 %v286_v54, %v2035_v51 }
 0x390   :  { %v299_v56 = vsel %vm295_vm3, %v292_v53, -inf }
 0x391   :  { %300 = vmax.xlane.f32.xlu1 %v299_v56  ;;  %v296_v57 = vsel %vm295_vm3, %v287_v55, -inf }
 0x392   :  { %297 = vmax.xlane.f32.xlu0 %v296_v57 }
 0x395   :  { %v1525_v58 = vpop.f32.mrb[4].mxu1 }
 0x396   :  { %v487_v59 = vpop.f32.mrb[5].mxu1  ;;  %v493_v61 = vadd.f32 %v1525_v58, %v2033_v50 }
 0x397   :  { %v488_v60 = vadd.f32 %v487_v59, %v2035_v51 }
 0x398   :  { %v499_v63 = vsel %vm295_vm3, %v493_v61, -inf }
 0x399   :  { %v496_v62 = vsel %vm295_vm3, %v488_v60, -inf }
 0x39a   :  { %497 = vmax.xlane.f32.xlu0 %v496_v62 }
 0x39e   :  { %500 = vmax.xlane.f32.xlu0 %v499_v63 }
 0x41e   :  { %v301_v2 = vpop.xlane.xlu1 %300 }
 0x41f   :  { %v303_v3 = vsub.f32 %v292_v53, %v301_v2  ;;  %v298_v4 = vpop.xlane.xlu0 %297 }
 0x420   :  { %v302_v5 = vsub.f32 %v287_v55, %v298_v4 }
 0x421   :  { %v306_v6 = vmul.f32 1.442695, %v303_v3 }
 0x422   :  { %v304_v7 = vmul.f32 1.442695, %v302_v5 }
 0x423   :  { %1744 = vpow2.f32 %v306_v6 }
 0x424   :  { %1746 = vpow2.f32 %v304_v7 }
 0x427   :  { %v498_v8 = vpop.xlane.xlu0 %497 }
 0x428   :  { %v502_v9 = vsub.f32 %v488_v60, %v498_v8 }
 0x42a   :  { %v504_v10 = vmul.f32 1.442695, %v502_v9 }
 0x42b   :  { %v501_v11 = vpop.xlane.xlu0 %500 }
 0x42c   :  { %1748 = vpow2.f32 %v504_v10  ;;  %v503_v12 = vsub.f32 %v493_v61, %v501_v11 }
 0x42d   :  { %v1745_v13 = vpop.eup %1744 }
 0x42e   :  { %v1747_v14 = vpop.eup %1746  ;;  %v506_v15 = vmul.f32 1.442695, %v503_v12  ;;  %v311_v16 = vsel %vm295_vm3, %v1745_v13, 0.0 }
 0x42f   :  { %312 = vadd.xlane.f32.xlu1 %v311_v16  ;;  %v308_v17 = vsel %vm295_vm3, %v1747_v14, 0.0 }
 0x430   :  { %1750 = vpow2.f32 %v506_v15  ;;  %309 = vadd.xlane.f32.xlu0 %v308_v17 }
 0x436   :  { %v1749_v18 = vpop.eup %1748 }
 0x437   :  { %v508_v19 = vsel %vm295_vm3, %v1749_v18, 0.0 }
 0x438   :  { %509 = vadd.xlane.f32.xlu0 %v508_v19 }
 0x43a   :  { %v1751_v20 = vpop.eup %1750 }
 0x43b   :  { %v511_v21 = vsel %vm295_vm3, %v1751_v20, 0.0 }
 0x43c   :  { %512 = vadd.xlane.f32.xlu1 %v511_v21 }
 0x44d   :  { %1716 = vrot.lane.b32.xlu1 %v2009_v38, %s1863_s24 }
 0x44e   :  { %1711 = vrot.lane.b32.xlu0 %v2009_v38, %s1864_s25  ;;  %s1873_s25 = smov [#allocation7]  }
 0x451   :  { %1721 = vrot.lane.b32.xlu1 %v2009_v38, %s1865_s26  ;;  %s1383_s26 = sshll.u32 %s1873_s25, 4  ;;  %s1384_s26 = int_to_ptr.vmem [resolvable:$true] %s1383_s26 }
 0x452   :  { %607 = vrot.lane.b32.xlu0 %v2001_v36, %s1866_s27  ;;  %p1833_p3 = scmp.lt.s32.totalorder %s1384_s26, %s1384_s26 }
 0x455   :  { %605 = vrot.lane.b32.xlu1 %v2003_v37, %s1866_s27  ;;  %s1828_s27 = scalar_lea.vmem %s1384_s26, 256 }
 0x456   :  { %p1829_p2 = scmp.ne.s32.totalorder %s1384_s26, %s1828_s27  ;;  %p1834_p4 = scmp.lt.s32.totalorder %s1828_s27, %s1828_s27 }
 0x458   :  { %p1835_p5 = por %p1834_p4, %p1833_p3 }
 0x45a   :  { %p1836_p6 = pnand %p1835_p5, %p1829_p2 }
 0x4bc   :  { %v313_v23 = vpop.xlane.xlu1 %312 }
 0x4bd   :  { %v310_v22 = vpop.xlane.xlu0 %309 }
 0x4be   :  { %1752 = vrcp.f32 %v310_v22 }
 0x4bf   :  { %1754 = vrcp.f32 %v313_v23 }
 0x4c5   :  { %v510_v24 = vpop.xlane.xlu0 %509 }
 0x4c6   :  { %1756 = vrcp.f32 %v510_v24 }
 0x4c8   :  { %v1753_v25 = vpop.eup %1752 }
 0x4c9   :  { %v513_v26 = vpop.xlane.xlu1 %512  ;;  %v1712_v27 = vpop.permute.xlu0 %1711  ;;  %v316_v28 = vmul.f32 %v1753_v25, %v1747_v14 }
 0x4ca   :  { %1758 = vrcp.f32 %v513_v26  ;;  %v1714_v29 = vunpack.i.h.bf16 %v1712_v27  ;;  %v1713_v30 = vunpack.i.l.bf16 %v1712_v27  ;;  %v1755_v32 = vpop.eup %1754 }
 0x4cb   :  { %1516 = vmatprep.mubr.msk.f32.mxu0 %vm295_vm3, %v316_v28  ;;  %v317_v41 = vmul.f32 %v1755_v32, %v1745_v13 }
 0x4cc   :  { %v1616_v31 = vpack.c.bf16 %v1714_v29, %v1713_v30 }
 0x4cd   :  { %v1717_v33 = vpop.permute.xlu1 %1716  ;;  %v608_v53 = vpop.permute.xlu0 %607 }
 0x4ce   :  { %v1719_v34 = vunpack.i.h.bf16 %v1717_v33  ;;  %v1718_v35 = vunpack.i.l.bf16 %v1717_v33  ;;  %1617 = vmatprep.subr.bf16.mxu0 %v1616_v31 }
 0x4cf   :  { %1619 = vmatpush3.bf16.msra.mxu0 %v1616_v31 }
 0x4d0   :  { %v1757_v39 = vpop.eup %1756  ;;  %v1626_v40 = vpack.c.bf16 %v1719_v34, %v1718_v35 }
 0x4d1   :  { %v1722_v42 = vpop.permute.xlu1 %1721  ;;  %v516_v43 = vmul.f32 %v1757_v39, %v1749_v18 }
 0x4d2   :  { %v1724_v44 = vunpack.i.h.bf16 %v1722_v42  ;;  %v1723_v46 = vunpack.i.l.bf16 %v1722_v42  ;;  %1517 = vmatmul.mubr.msk.f32.vlgmr.msra.gmra.mrb[0].mxu0 %vm295_vm3, %v317_v41  ;;  %1627 = vmatprep.subr.bf16.mxu0 %v1626_v40 }
 0x4d3   :  { %1629 = vmatpush3.bf16.msra.mxu0 %v1626_v40  ;;  %1530 = vmatprep.mubr.msk.f32.mxu0 %vm295_vm3, %v516_v43 }
 0x4d4   :  { %v1759_v47 = vpop.eup %1758  ;;  %v1630_v48 = vpack.c.bf16 %v1724_v44, %v1723_v46 }
 0x4d5   :  { %v517_v49 = vmul.f32 %v1759_v47, %v1751_v20  ;;  %v606_v52 = vpop.permute.xlu1 %605 }
 0x4d6   :  { %1632 = vmatprep.subr.msk.bf16.mxu0 %vm2017_vm2, %v1630_v48 }
 0x4d7   :  { %1531 = vmatmul.mubr.msk.f32.vlgmr.msra.gmra.mrb[2].mxu0 %vm295_vm3, %v517_v49 }
 0x4d8   :  { %1537 = vmatprep.mubr.msk.f32.mxu0 %vm211_vm1, %v606_v52 }
 0x4dc   :  { %1635 = vmatpush3.bf16.xpose.msk.msra.mxu0 %vm2017_vm2, %v1630_v48 }
 0x4e3   :  { %1538 = vmatmul.mubr.msk.f32.vlgmr.msra.gmra.mrb[4].mxu0 %vm211_vm1, %v608_v53 }
 0x5a5   :  { %v2064_v54 = vpop.f32.mrb[0].mxu0 }
 0x5a6   :  { %v2066_v55 = vpop.f32.mrb[1].mxu0 }
 0x5aa   :  { %v2068_v56 = vpop.f32.mrb[2].mxu0 }
 0x5ab   :  { %v2070_v57 = vpop.f32.mrb[3].mxu0 }
 0x5b6   :  { %v1539_v58 = vpop.f32.mrb[4].mxu0 }
 0x5b7   :  { %v693_v59 = vadd.f32 %v1539_v58, %v2033_v50  ;;  %v687_v60 = vpop.f32.mrb[5].mxu0 }
 0x5b8   :  { %v688_v61 = vadd.f32 %v687_v60, %v2035_v51  ;;  %v1038_v60 = vld [vmem:[%s2209_s3 + $0x10] sm:$0xff] }
 0x5b9   :  { %v699_v62 = vsel %vm295_vm3, %v693_v59, -inf }
 0x5ba   :  { %700 = vmax.xlane.f32.xlu0 %v699_v62  ;;  %v696_v63 = vsel %vm295_vm3, %v688_v61, -inf  ;;  %v1039_v62 = vld [vmem:[%s2209_s3 + $0x18] sm:$0xff] }
 0x5bb   :  { %697 = vmax.xlane.f32.xlu1 %v696_v63  ;;  %v1654_v63 = vpack.c.bf16 %v1039_v62, %v1038_v60  ;;  %v1284_v62 = vld [vmem:[%s2216_s10 + $0x38] sm:$0xff] }
 0x5cc   :  { %1726 = vrot.lane.b32.xlu1 %v2009_v38, %s1867_s0 }
 0x5d0   :  { %805 = vrot.lane.b32.xlu1 %v2003_v37, %s1868_s22 }
 0x5d4   :  { %807 = vrot.lane.b32.xlu1 %v2001_v36, %s1868_s22 }
 0x647   :  { %v701_v2 = vpop.xlane.xlu0 %700 }
 0x648   :  { %v703_v3 = vsub.f32 %v693_v59, %v701_v2  ;;  %v698_v4 = vpop.xlane.xlu1 %697  ;;  %v1036_v59 = vld [vmem:[%s2209_s3] sm:$0xff] }
 0x649   :  { %v702_v5 = vsub.f32 %v688_v61, %v698_v4 }
 0x64a   :  { %v706_v6 = vmul.f32 1.442695, %v703_v3 }
 0x64b   :  { %v704_v7 = vmul.f32 1.442695, %v702_v5 }
 0x64c   :  { %1760 = vpow2.f32 %v706_v6  ;;  %v1727_v8 = vpop.permute.xlu1 %1726 }
 0x64d   :  { %v1729_v9 = vunpack.i.h.bf16 %v1727_v8  ;;  %v1728_v10 = vunpack.i.l.bf16 %v1727_v8  ;;  %1762 = vpow2.f32 %v704_v7 }
 0x64f   :  { %v1636_v11 = vpack.c.bf16 %v1729_v9, %v1728_v10 }
 0x650   :  { %v806_v24 = vpop.permute.xlu1 %805 }
 0x651   :  { %1637 = vmatprep.subr.bf16.mxu1 %v1636_v11 }
 0x652   :  { %1639 = vmatpush3.bf16.msra.mxu1 %v1636_v11 }
 0x654   :  { %v808_v25 = vpop.permute.xlu1 %807 }
 0x656   :  { %v1761_v12 = vpop.eup %1760 }
 0x657   :  { %v711_v13 = vsel %vm295_vm3, %v1761_v12, 0.0  ;;  %v1763_v37 = vpop.eup %1762 }
 0x658   :  { %712 = vadd.xlane.f32.xlu0 %v711_v13  ;;  %v708_v36 = vsel %vm295_vm3, %v1763_v37, 0.0 }
 0x65c   :  { %709 = vadd.xlane.f32.xlu0 %v708_v36 }
 0x672   :  { %1731 = vrot.lane.b32.xlu0 %v2009_v38, %s1869_s1 }
 0x6e5   :  { %v713_v14 = vpop.xlane.xlu0 %712 }
 0x6e6   :  { %1764 = vrcp.f32 %v713_v14 }
 0x6e9   :  { %v710_v15 = vpop.xlane.xlu0 %709 }
 0x6ea   :  { %1766 = vrcp.f32 %v710_v15 }
 0x6ed   :  { %v1732_v16 = vpop.permute.xlu0 %1731 }
 0x6ee   :  { %v1734_v17 = vunpack.i.h.bf16 %v1732_v16  ;;  %v1733_v18 = vunpack.i.l.bf16 %v1732_v16 }
 0x6f0   :  { %v1640_v19 = vpack.c.bf16 %v1734_v17, %v1733_v18  ;;  %v1765_v20 = vpop.eup %1764 }
 0x6f1   :  { %v717_v23 = vmul.f32 %v1765_v20, %v1761_v12 }
 0x6f2   :  { %1642 = vmatprep.subr.msk.bf16.mxu1 %vm2017_vm2, %v1640_v19 }
 0x6f4   :  { %v1767_v21 = vpop.eup %1766 }
 0x6f5   :  { %v716_v22 = vmul.f32 %v1767_v21, %v1763_v37 }
 0x6f7   :  { %1544 = vmatprep.mubr.msk.f32.mxu1 %vm295_vm3, %v716_v22 }
 0x6f8   :  { %1545 = vmatmul.mubr.msk.f32.vlgmr.msra.gmra.mrb[6].mxu1 %vm295_vm3, %v717_v23 }
 0x6f9   :  { %1645 = vmatpush3.bf16.xpose.msk.msra.mxu1 %vm2017_vm2, %v1640_v19  ;;  %1551 = vmatprep.mubr.msk.f32.mxu1 %vm211_vm1, %v806_v24 }
 0x700   :  { %1552 = vmatmul.mubr.msk.f32.vlgmr.msra.gmra.mrb[8].mxu1 %vm211_vm1, %v808_v25 }
 0x7cb   :  { %v1546_v26 = vpop.f32.mrb[6].mxu1 }
 0x7cc   :  { %v796_v27 = vpop.f32.mrb[7].mxu1 }
 0x7d3   :  { %v1553_v28 = vpop.f32.mrb[8].mxu1 }
 0x7d4   :  { %v893_v29 = vadd.f32 %v1553_v28, %v2033_v50  ;;  %v887_v30 = vpop.f32.mrb[9].mxu1 }
 0x7d5   :  { %v888_v31 = vadd.f32 %v887_v30, %v2035_v51  ;;  %v1170_v30 = vld [vmem:[%s2214_s8 + $0x18] sm:$0xff] }
 0x7d6   :  { %v899_v32 = vsel %vm295_vm3, %v893_v29, -inf }
 0x7d7   :  { %900 = vmax.xlane.f32.xlu0 %v899_v32  ;;  %v896_v33 = vsel %vm295_vm3, %v888_v31, -inf }
 0x7d8   :  { %897 = vmax.xlane.f32.xlu1 %v896_v33 }
 0x7e9   :  { %1736 = vrot.lane.b32.xlu1 %v2009_v38, %s1870_s28 }
 0x7ed   :  { %1009 = vrot.lane.b32.xlu1 %v2068_v56, %s1858_s14 }
 0x7f1   :  { %1015 = vrot.lane.b32.xlu1 %v796_v27, %s1871_s29  ;;  %v1168_v27 = vld [vmem:[%s2214_s8 + $0x8] sm:$0xff] }
 0x7f5   :  { %1017 = vrot.lane.b32.xlu1 %v1546_v26, %s1871_s29  ;;  %v1167_v26 = vld [vmem:[%s2214_s8] sm:$0xff] }
 0x7f6   :  { %v1658_v28 = vpack.c.bf16 %v1168_v27, %v1167_v26 }
 0x7f8   :  { %1659 = vmatprep.subr.bf16.mxu1 %v1658_v28 }
 0x7f9   :  { %1661 = vmatpush3.bf16.msra.mxu1 %v1658_v28 }
 0x864   :  { %v901_v45 = vpop.xlane.xlu0 %900 }
 0x865   :  { %v903_v50 = vsub.f32 %v893_v29, %v901_v45  ;;  %v898_v34 = vpop.xlane.xlu1 %897  ;;  %v1169_v29 = vld [vmem:[%s2214_s8 + $0x10] sm:$0xff] }
 0x866   :  { %v902_v35 = vsub.f32 %v888_v31, %v898_v34  ;;  %v1662_v31 = vpack.c.bf16 %v1170_v30, %v1169_v29 }
 0x867   :  { %v906_v51 = vmul.f32 1.442695, %v903_v50 }
 0x868   :  { %v904_v39 = vmul.f32 1.442695, %v902_v35  ;;  %1663 = vmatprep.subr.bf16.mxu1 %v1662_v31 }
 0x869   :  { %v1737_v40 = vpop.permute.xlu1 %1736  ;;  %1665 = vmatpush3.bf16.msra.mxu1 %v1662_v31 }
 0x86a   :  { %1768 = vpow2.f32 %v904_v39  ;;  %v1739_v41 = vunpack.i.h.bf16 %v1737_v40  ;;  %v1738_v42 = vunpack.i.l.bf16 %v1737_v40  ;;  %v1426_v39 = vld [vmem:[%s2212_s6] ss:$0 sm:$0xff] }
 0x86b   :  { %1770 = vpow2.f32 %v906_v51 }
 0x86c   :  { %v1646_v43 = vpack.c.bf16 %v1739_v41, %v1738_v42  ;;  %v1427_v41 = vld [vmem:[%s2213_s7] ss:$0 sm:$0xff] }
 0x86d   :  { %v1010_v4 = vpop.permute.xlu1 %1009 }
 0x86e   :  { %1647 = vmatprep.subr.bf16.mxu0 %v1646_v43  ;;  %v1030_v10 = vsel %vm211_vm1, %v2064_v54, %v1010_v4 }
 0x86f   :  { %1649 = vmatpush3.bf16.msra.mxu0 %v1646_v43 }
 0x871   :  { %v1016_v5 = vpop.permute.xlu1 %1015 }
 0x874   :  { %v1769_v38 = vpop.eup %1768 }
 0x875   :  { %v908_v44 = vsel %vm295_vm3, %v1769_v38, 0.0  ;;  %v1771_v46 = vpop.eup %1770  ;;  %v1018_v7 = vpop.permute.xlu1 %1017 }
 0x876   :  { %909 = vadd.xlane.f32.xlu0 %v908_v44  ;;  %v911_v47 = vsel %vm295_vm3, %v1771_v46, 0.0  ;;  %v1032_v13 = vsel %vm295_vm3, %v1030_v10, %v1018_v7 }
 0x87a   :  { %912 = vadd.xlane.f32.xlu0 %v911_v47 }
 0x890   :  { %1007 = vrot.lane.b32.xlu0 %v2070_v57, %s1858_s14  ;;  %v1037_v57 = vld [vmem:[%s2209_s3 + $0x8] sm:$0xff] }
 0x891   :  { %v1650_v61 = vpack.c.bf16 %v1037_v57, %v1036_v59  ;;  %v1282_v57 = vld [vmem:[%s2216_s10 + $0x28] sm:$0xff] }
 0x893   :  { %1651 = vmatprep.subr.bf16.mxu0 %v1650_v61 }
 0x903   :  { %v910_v48 = vpop.xlane.xlu0 %909 }
 0x904   :  { %1772 = vrcp.f32 %v910_v48  ;;  %v1277_v48 = vld [vmem:[%s2216_s10] sm:$0xff] }
 0x907   :  { %v913_v49 = vpop.xlane.xlu0 %912 }
 0x908   :  { %1774 = vrcp.f32 %v913_v49  ;;  %v1278_v49 = vld [vmem:[%s2216_s10 + $0x8] sm:$0xff] }
 0x90b   :  { %v1008_v6 = vpop.permute.xlu0 %1007 }
 0x90c   :  { %v1029_v8 = vsel %vm211_vm1, %v2066_v55, %v1008_v6 }
 0x90d   :  { %v1031_v11 = vsel %vm295_vm3, %v1029_v8, %v1016_v5 }
 0x90e   :  { %v1773_v52 = vpop.eup %1772 }
 0x90f   :  { %v916_v53 = vmul.f32 %v1773_v52, %v1769_v38  ;;  %v1666_v52 = vpack.c.bf16 %v1278_v49, %v1277_v48 }
 0x911   :  { %1558 = vmatprep.mubr.msk.f32.mxu0 %vm295_vm3, %v916_v53  ;;  %v1279_v53 = vld [vmem:[%s2216_s10 + $0x10] sm:$0xff] }
 0x912   :  { %v1775_v56 = vpop.eup %1774 }
 0x913   :  { %v917_v58 = vmul.f32 %v1775_v56, %v1771_v46  ;;  %v1280_v56 = vld [vmem:[%s2216_s10 + $0x18] sm:$0xff] }
 0x914   :  { %v1670_v59 = vpack.c.bf16 %v1280_v56, %v1279_v53 }
 0x915   :  { %1559 = vmatmul.mubr.msk.f32.vlgmr.msra.gmra.mrb[6].mxu0 %vm295_vm3, %v917_v58  ;;  %v1281_v58 = vld [vmem:[%s2216_s10 + $0x20] sm:$0xff] }
 0x916   :  { %1653 = vmatpush3.bf16.msra.mxu0 %v1650_v61  ;;  %v1674_v60 = vpack.c.bf16 %v1282_v57, %v1281_v58  ;;  %v1283_v61 = vld [vmem:[%s2216_s10 + $0x30] sm:$0xff] }
 0x917   :  { %1655 = vmatprep.subr.bf16.mxu0 %v1654_v63 }
 0x91a   :  { %1657 = vmatpush3.bf16.msra.mxu0 %v1654_v63  ;;  %v1678_v63 = vpack.c.bf16 %v1284_v62, %v1283_v61 }
 0x91b   :  { %1667 = vmatprep.subr.bf16.mxu0 %v1666_v52 }
 0x9e8   :  { %v1560_v2 = vpop.f32.mrb[6].mxu0 }
 0x9e9   :  { %1025 = vrot.lane.b32.xlu1 %v1560_v2, %s1872_s21  ;;  %v996_v3 = vpop.f32.mrb[7].mxu0  ;;  %v1428_v2 = vld [vmem:[%s2215_s9] ss:$0 sm:$0xff] }
 0x9ea   :  { %1023 = vrot.lane.b32.xlu0 %v996_v3, %s1872_s21 }
 0xa5b   :  { %v1026_v9 = vpop.permute.xlu1 %1025 }
 0xa5c   :  { %v1024_v12 = vpop.permute.xlu0 %1023  ;;  %v1035_v36 = vsel %vm1033_vm4, %v1032_v13, %v1026_v9 }
 0xa5d   :  { %v1034_v37 = vsel %vm1033_vm4, %v1031_v11, %v1024_v12 }
 0xa5e   :  { %1569 = vmatprep.mubr.msk.f32.mxu0 %vm76_vm0, %v1034_v37 }
 0xa5f   :  { %1570 = vmatmul.mubr.msk.f32.vlgmr.msra.gmra.mrb[8].mxu0 %vm76_vm0, %v1035_v36 }
 0xa60   :  { %1669 = vmatpush3.bf16.msra.mxu0 %v1666_v52 }
 0xa61   :  { %1671 = vmatprep.subr.bf16.mxu0 %v1670_v59 }
 0xa64   :  { %1673 = vmatpush3.bf16.msra.mxu0 %v1670_v59 }
 0xa65   :  { %1675 = vmatprep.subr.bf16.mxu0 %v1674_v60 }
 0xa68   :  { %1677 = vmatpush3.bf16.msra.mxu0 %v1674_v60 }
 0xa69   :  { %1679 = vmatprep.subr.bf16.mxu0 %v1678_v63 }
 0xa6c   :  { %1681 = vmatpush3.bf16.msra.mxu0 %v1678_v63 }
 0xb32   :  { %v1571_v14 = vpop.f32.mrb[8].mxu0 }
 0xb33   :  { %v2124_v15 = vadd.f32 %v1571_v14, %v1971_v1  ;;  %v1112_v55 = vpop.f32.mrb[9].mxu0 }
 0xb34   :  { %v2127_v16 = vadd.f32 %v1112_v55, %v1969_v0 }
 0xb35   :  { %v1128_v54 = vsel %vm76_vm0, %v2124_v15, 0.0 }
 0xb36   :  { %1129 = vadd.xlane.f32.xlu1 %v1128_v54  ;;  %v1125_v17 = vsel %vm76_vm0, %v2127_v16, 0.0 }
 0xb37   :  { %1126 = vadd.xlane.f32.xlu0 %v1125_v17 }
 0xbc3   :  { %v1130_v18 = vpop.xlane.xlu1 %1129 }
 0xbc4   :  { %v1132_v19 = vmul.f32 0.03125, %v1130_v18  ;;  %v1127_v20 = vpop.xlane.xlu0 %1126 }
 0xbc5   :  { %v1131_v21 = vmul.f32 0.03125, %v1127_v20 }
 0xbc6   :  { %v1134_v22 = vsub.f32 %v2124_v15, %v1132_v19 }
 0xbc7   :  { %v1133_v1 = vsub.f32 %v2127_v16, %v1131_v21 }
 0xbc8   :  { %v1136_v24 = vmul.f32 %v1134_v22, %v1134_v22 }
 0xbc9   :  { %v1135_v23 = vmul.f32 %v1133_v1, %v1133_v1 }
 0xbca   :  { %v1140_v25 = vsel %vm76_vm0, %v1136_v24, 0.0 }
 0xbcb   :  { %v1137_v0 = vsel %vm76_vm0, %v1135_v23, 0.0 }
 0xbcc   :  { %1138 = vadd.xlane.f32.xlu0 %v1137_v0 }
 0xbd0   :  { %1141 = vadd.xlane.f32.xlu0 %v1140_v25 }
 0xc59   :  { %v1139_v32 = vpop.xlane.xlu0 %1138 }
 0xc5a   :  { %v1143_v33 = vmul.f32 0.03125, %v1139_v32 }
 0xc5c   :  { %v1145_v45 = vadd.f32 1e-05, %v1143_v33 }
 0xc5d   :  { %v1142_v50 = vpop.xlane.xlu0 %1141 }
 0xc5e   :  { %1776 = vrsqrt.f32 %v1145_v45  ;;  %v1144_v34 = vmul.f32 0.03125, %v1142_v50 }
 0xc60   :  { %v1146_v35 = vadd.f32 1e-05, %v1144_v34 }
 0xc62   :  { %1778 = vrsqrt.f32 %v1146_v35 }
 0xc68   :  { %v1777_v51 = vpop.eup %1776 }
 0xc69   :  { %v1149_v40 = vmul.f32 %v1777_v51, %v1133_v1  ;;  %v1431_v1 = vld [vmem:[%s2217_s11] ss:$0 sm:$0xff] }
 0xc6b   :  { %v1157_v42 = vmul.f32 %v1426_v39, %v1149_v40 }
 0xc6c   :  { %v1779_v43 = vpop.eup %1778 }
 0xc6d   :  { %v1150_v38 = vmul.f32 %v1779_v43, %v1134_v22  ;;  %v1165_v44 = vadd.f32 %v1427_v41, %v1157_v42 }
 0xc6f   :  { %v1158_v46 = vmul.f32 %v1426_v39, %v1150_v38  ;;  %1580 = vmatprep.mubr.msk.f32.mxu1 %vm76_vm0, %v1165_v44 }
 0xc71   :  { %v1166_v47 = vadd.f32 %v1427_v41, %v1158_v46 }
 0xc73   :  { %1581 = vmatmul.mubr.msk.f32.vlgmr.msra.gmra.mrb[10].mxu1 %vm76_vm0, %v1166_v47 }
 0xd46   :  { %v1582_v3 = vpop.f32.mrb[10].mxu1 }
 0xd47   :  { %v1256_v4 = vadd.f32 %v1582_v3, %v1428_v2  ;;  %v1250_v5 = vpop.f32.mrb[11].mxu1 }
 0xd48   :  { %v1251_v6 = vadd.f32 %v1428_v2, %v1250_v5 }
 0xd49   :  { %v1262_v7 = vmul.f32 0.044715, %v1256_v4  ;;  %v1260_v20 = vmul.f32 0.5, %v1256_v4 }
 0xd4a   :  { %v1261_v8 = vmul.f32 0.044715, %v1251_v6  ;;  %v1259_v18 = vmul.f32 0.5, %v1251_v6 }
 0xd4b   :  { %v1264_v9 = vmul.f32 %v1262_v7, %v1256_v4 }
 0xd4c   :  { %v1263_v10 = vmul.f32 %v1261_v8, %v1251_v6 }
 0xd4d   :  { %v1266_v11 = vmul.f32 %v1264_v9, %v1256_v4 }
 0xd4e   :  { %v1265_v12 = vmul.f32 %v1263_v10, %v1251_v6 }
 0xd4f   :  { %v1268_v13 = vadd.f32 %v1266_v11, %v1256_v4 }
 0xd50   :  { %v1267_v37 = vadd.f32 %v1265_v12, %v1251_v6 }
 0xd51   :  { %v1270_v36 = vmul.f32 0.7978846, %v1268_v13 }
 0xd52   :  { %v1269_v14 = vmul.f32 0.7978846, %v1267_v37 }
 0xd53   :  { %1780 = vtanh.f32 %v1270_v36 }
 0xd54   :  { %1782 = vtanh.f32 %v1269_v14 }
 0xd5d   :  { %v1781_v55 = vpop.eup %1780 }
 0xd5e   :  { %v1783_v54 = vpop.eup %1782  ;;  %v1274_v17 = vadd.f32 1.0, %v1781_v55 }
 0xd5f   :  { %v1273_v19 = vadd.f32 1.0, %v1783_v54 }
 0xd60   :  { %v1276_v22 = vmul.f32 %v1274_v17, %v1260_v20 }
 0xd61   :  { %v1275_v21 = vmul.f32 %v1273_v19, %v1259_v18 }
 0xd63   :  { %1599 = vmatprep.mubr.msk.f32.mxu0 %vm1292_vm5, %v1275_v21 }
 0xd64   :  { %1600 = vmatmul.mubr.msk.f32.vlgmr.msra.gmra.mrb[10].mxu0 %vm1292_vm5, %v1276_v22 }
 0xe37   :  { %v1601_v23 = vpop.f32.mrb[10].mxu0 }
 0xe38   :  { %v1371_v0 = vadd.f32 %v1601_v23, %v1431_v1  ;;  %v1365_v24 = vpop.f32.mrb[11].mxu0 }
 0xe39   :  { %v1366_v25 = vadd.f32 %v1431_v1, %v1365_v24 }
 0xe3a   :  { %v1375_v26 = vadd.f32 %v1371_v0, %v2124_v15 }
 0xe3b   :  { %v1374_v27 = vadd.f32 %v1366_v25, %v2127_v16 }
 0xe3c   :  { %1377 = vst.msk [vmem:[#allocation7 + $0x8] sm:$0xff] %vm76_vm0, %v1375_v26 }
 0xe3d   :  { %1376 = vst.msk [vmem:[#allocation7] sm:$0xff] %vm76_vm0, %v1374_v27 }
 0xe3e   :  { %1839 = shalt.err (!%p1836_p6)
}
 0xe3f   :  { %s1840_s22 = scalar_lea.hbm %s2218_s12, 256 }
 0xe40   :  { %p1841_p7 = scmp.ne.s32.totalorder %s2218_s12, %s1840_s22  ;;  %p1844_p8 = scmp.lt.u32.totalorder %s1840_s22, %s2218_s12 }
 0xe42   :  { %p1846_p9 = pnand %p1844_p8, %p1841_p7 }
 0xe44   :  { %1849 = shalt.err (!%p1846_p9)
}
 0xe45   :  { %1389 = dma.vmem_to_hbm [thread:$0]  %s1384_s26, 256, %s2218_s12, [#allocation4], %s1857_s13, %s1857_s13, %s1858_s14  }
 0xe46   :  { %1854 = dma.done.wait [#allocation4], 256  }
 0xe47   :  { %1855 = vsyncadd [#allocation4], 4294967040 }
 0xe48   :  { %1393 = vsyncpa [#allocation3], 1 }
 0xe49   :  { %1394 = vsyncpa [#allocation6], 1 }
 0xe4a   :  { %1395 = vsyncpa [#allocation4], 1 }

</bundles_post_ra>
